<compile_context>
chip_gen: v6e
topology: v6e:2x2x1
jax: 0.10.0
libtpu: 0.0.40
codegen_flags: <defaults>
</compile_context>

<pallas_src>
import functools

import jax
import jax.numpy as jnp
import numpy as np
from jax.experimental import pallas as pl
from jax.experimental.pallas import tpu as pltpu


def _sep_conv_kernel(x_ref, mask_ref, wdw_ref, wpw_ref, bias_ref, o_ref, *,
                     C_in, C_out, H, W):
    # x_ref   : (1, C_in, H*W)   flattened NCHW sample, H*W on the lane axis
    # mask_ref: (4, H*W)         border masks [w>=1, w<=W-2, h>=1, h<=H-2]
    # wdw_ref : (C_in, 9)        depthwise 3x3 taps, row-major (kh*3+kw)
    # wpw_ref : (C_out, C_in)    pointwise weight with BN scale folded in
    # bias_ref: (C_out, 1)       folded bias
    # o_ref   : (1, C_out, H*W)  lane-dense output
    HW = H * W
    x = x_ref[0].astype(jnp.float32)                       # (C_in, HW)

    def shift_lanes(a, off):
        # result[:, j] = a[:, (j + off) % HW]  (static shift; lane rotation)
        if off == 0:
            return a
        k = off % HW
        return jnp.concatenate([a[:, k:], a[:, :k]], axis=1)

    m = mask_ref[...].astype(jnp.float32)                  # (4, HW)
    wmask = {0: m[0:1, :], 2: m[1:2, :]}                   # left / right valid
    hmask = {0: m[2:3, :], 2: m[3:4, :]}                   # top / bottom valid

    wdw = wdw_ref[...].astype(jnp.float32)                 # (C_in, 9)

    # Horizontal (dw) shifted + masked slabs, computed once, reused over dh.
    cols = []
    for dw in range(3):
        s = shift_lanes(x, dw - 1)
        if dw != 1:
            s = s * wmask[dw]
        cols.append(s)

    # Depthwise 3x3 (stride 1, pad 1); accumulator initialised from tap (0,0).
    acc = None
    for dh in range(3):
        for dw in range(3):
            s = shift_lanes(cols[dw], (dh - 1) * W)
            if dh != 1:
                s = s * hmask[dh]
            idx = dh * 3 + dw
            term = s * wdw[:, idx:idx + 1]                 # per-channel tap
            acc = term if acc is None else acc + term      # (C_in, HW) f32

    # Pointwise 1x1 conv with folded BatchNorm: exact-f32 VPU unroll over C_in
    # (MXU would be <2% utilised at C_in = C_out = 4).
    wpw = wpw_ref[...].astype(jnp.float32)                 # (C_out, C_in)
    y = None
    for ci in range(C_in):
        t = jnp.broadcast_to(acc[ci:ci + 1, :], (C_out, HW)) * wpw[:, ci:ci + 1]
        y = t if y is None else y + t
    y = y + bias_ref[...].astype(jnp.float32)              # (C_out, 1) broadcast
    y = jnp.maximum(y, 0.0)                                # ReLU

    o_ref[0] = y.astype(o_ref.dtype)                       # lane-dense store


def separable_conv_block(x_nchw, w_dw, w_pw, bias,
                         gamma, beta, running_mean, running_var, eps=1e-3):
    """w_dw: (C_in,1,3,3)  w_pw: (C_out,C_in,1,1)  bias/gamma/beta/mean/var: (C_out,)"""
    N, C_in, H, W = x_nchw.shape
    C_out = w_pw.shape[0]
    HW = H * W

    # ---- fold BatchNorm (eval / running stats) into the pointwise conv ----
    scale = gamma * jax.lax.rsqrt(running_var + eps)                 # (C_out,)
    wpw_f = w_pw[:, :, 0, 0] * scale[:, None]                        # (C_out, C_in)
    bias_f = ((bias - running_mean) * scale + beta)[:, None]         # (C_out, 1)

    wdw_f = w_dw[:, 0, :, :].reshape(C_in, 9)                        # (C_in, 9)

    # ---- border-validity masks for the 1-pixel halo (tiny, grid-invariant) ----
    idx = jnp.arange(HW, dtype=jnp.int32)
    w_pos = idx % W
    h_pos = idx // W
    masks = jnp.stack([w_pos >= 1, w_pos <= W - 2,
                       h_pos >= 1, h_pos <= H - 2]).astype(jnp.float32)  # (4, HW)

    # NCHW -> (N, C, H*W): metadata-only reshape, no extra HBM traffic.
    x_flat = x_nchw.reshape(N, C_in, HW)

    kernel = functools.partial(_sep_conv_kernel, C_in=C_in, C_out=C_out, H=H, W=W)

    out_flat = pl.pallas_call(
        kernel,
        out_shape=jax.ShapeDtypeStruct((N, C_out, HW), x_nchw.dtype),
        grid=(N,),
        in_specs=[
            pl.BlockSpec((1, C_in, HW), lambda n: (n, 0, 0)),
            pl.BlockSpec((4, HW), lambda n: (0, 0)),
            pl.BlockSpec((C_in, 9), lambda n: (0, 0)),
            pl.BlockSpec((C_out, C_in), lambda n: (0, 0)),
            pl.BlockSpec((C_out, 1), lambda n: (0, 0)),
        ],
        out_specs=pl.BlockSpec((1, C_out, HW), lambda n: (n, 0, 0)),
        compiler_params=pltpu.CompilerParams(
            dimension_semantics=("parallel",),
        ),
    )(x_flat, masks, wdw_f, wpw_f, bias_f)

    return out_flat.reshape(N, C_out, H, W)                          # NCHW


def _reference(x, w_dw, w_pw, bias, gamma, beta, mean, var, eps=1e-3):
    """Pure-JAX reference (lax convolutions, NCHW, eval-mode BN)."""
    dn = ("NCHW", "OIHW", "NCHW")
    y = jax.lax.conv_general_dilated(x, w_dw, (1, 1), ((1, 1), (1, 1)),
                                     dimension_numbers=dn,
                                     feature_group_count=x.shape[1],
                                     precision=jax.lax.Precision.HIGHEST)
    y = jax.lax.conv_general_dilated(y, w_pw, (1, 1), "VALID",
                                     dimension_numbers=dn,
                                     precision=jax.lax.Precision.HIGHEST)
    y = y + bias[None, :, None, None]
    y = (y - mean[None, :, None, None]) * (
        gamma[None, :, None, None] / jnp.sqrt(var[None, :, None, None] + eps))
    y = y + beta[None, :, None, None]
    return jnp.maximum(y, 0.0)


if __name__ == "__main__":
    key = jax.random.PRNGKey(0)
    kx, kdw, kpw, kb, kg, kbt, km, kv = jax.random.split(key, 8)

    N, C_in, H, W = 2, 4, 16, 16
    C_out = C_in  # out_channels=None -> out_channels = in_channels

    x = jax.random.normal(kx, (N, C_in, H, W), jnp.float32)
    w_dw = jax.random.normal(kdw, (C_in, 1, 3, 3), jnp.float32) * 0.1
    w_pw = jax.random.normal(kpw, (C_out, C_in, 1, 1), jnp.float32) * 0.1
    bias = jax.random.normal(kb, (C_out,), jnp.float32) * 0.1
    gamma = 1.0 + 0.1 * jax.random.normal(kg, (C_out,), jnp.float32)
    beta = 0.1 * jax.random.normal(kbt, (C_out,), jnp.float32)
    running_mean = 0.1 * jax.random.normal(km, (C_out,), jnp.float32)
    running_var = jnp.abs(1.0 + 0.1 * jax.random.normal(kv, (C_out,), jnp.float32))

    out = separable_conv_block(x, w_dw, w_pw, bias, gamma, beta,
                               running_mean, running_var)
    out = jax.block_until_ready(out)

    ref = _reference(x, w_dw, w_pw, bias, gamma, beta,
                     running_mean, running_var)
    np.testing.assert_allclose(np.asarray(out), np.asarray(ref),
                               rtol=1e-4, atol=1e-4)

    print("KERNEL_OK")
</pallas_src>

<mosaic_0001>
module attributes {stable_mosaic.version = 11 : i64} {
  func.func @_sep_conv_kernel(%arg0: i32, %arg1: memref<1x4x256xf32, #tpu.memory_space<vmem>>, %arg2: memref<4x256xf32, #tpu.memory_space<vmem>>, %arg3: memref<4x9xf32, #tpu.memory_space<vmem>>, %arg4: memref<4x4xf32, #tpu.memory_space<vmem>>, %arg5: memref<4x1xf32, #tpu.memory_space<vmem>>, %arg6: memref<1x4x256xf32, #tpu.memory_space<vmem>>) attributes {dimension_semantics = [#tpu.dimension_semantics<parallel>], iteration_bounds = array<i64: 2>, scalar_prefetch = 0 : i64, scratch_operands = 0 : i64, tpu.core_type = #tpu.core_type<tc>, window_params = [{transform_indices = @transform_0, window_bounds = array<i64: 1, 4, 256>}, {pipeline_mode = #tpu.pipeline_mode<synchronous>, transform_indices = @transform_1, window_bounds = array<i64: 4, 256>}, {pipeline_mode = #tpu.pipeline_mode<synchronous>, transform_indices = @transform_2, window_bounds = array<i64: 4, 9>}, {pipeline_mode = #tpu.pipeline_mode<synchronous>, transform_indices = @transform_3, window_bounds = array<i64: 4, 4>}, {pipeline_mode = #tpu.pipeline_mode<synchronous>, transform_indices = @transform_4, window_bounds = array<i64: 4, 1>}, {transform_indices = @transform_5, window_bounds = array<i64: 1, 4, 256>}]} {
    %c0 = arith.constant 0 : index
    %c0_0 = arith.constant 0 : index
    %c0_1 = arith.constant 0 : index
    %0 = vector.load %arg1[%c0, %c0_0, %c0_1] : memref<1x4x256xf32, #tpu.memory_space<vmem>>, vector<1x4x256xf32>
    %1 = vector.shape_cast %0 : vector<1x4x256xf32> to vector<4x256xf32>
    %c0_2 = arith.constant 0 : index
    %c0_3 = arith.constant 0 : index
    %2 = vector.load %arg2[%c0_2, %c0_3] : memref<4x256xf32, #tpu.memory_space<vmem>>, vector<4x256xf32>
    %3 = vector.extract_strided_slice %2 {offsets = [0, 0], sizes = [1, 256], strides = [1, 1]} : vector<4x256xf32> to vector<1x256xf32>
    %4 = vector.extract_strided_slice %2 {offsets = [1, 0], sizes = [1, 256], strides = [1, 1]} : vector<4x256xf32> to vector<1x256xf32>
    %5 = vector.extract_strided_slice %2 {offsets = [2, 0], sizes = [1, 256], strides = [1, 1]} : vector<4x256xf32> to vector<1x256xf32>
    %6 = vector.extract_strided_slice %2 {offsets = [3, 0], sizes = [1, 256], strides = [1, 1]} : vector<4x256xf32> to vector<1x256xf32>
    %c0_4 = arith.constant 0 : index
    %c0_5 = arith.constant 0 : index
    %7 = vector.load %arg3[%c0_4, %c0_5] : memref<4x9xf32, #tpu.memory_space<vmem>>, vector<4x9xf32>
    %8 = vector.extract_strided_slice %1 {offsets = [0, 255], sizes = [4, 1], strides = [1, 1]} : vector<4x256xf32> to vector<4x1xf32>
    %9 = vector.extract_strided_slice %1 {offsets = [0, 0], sizes = [4, 255], strides = [1, 1]} : vector<4x256xf32> to vector<4x255xf32>
    %10 = tpu.concatenate %8, %9 in 1 : vector<4x1xf32>, vector<4x255xf32> -> vector<4x256xf32>
    %11 = vector.broadcast %3 : vector<1x256xf32> to vector<4x256xf32>
    %12 = arith.mulf %10, %11 : vector<4x256xf32>
    %13 = vector.extract_strided_slice %1 {offsets = [0, 1], sizes = [4, 255], strides = [1, 1]} : vector<4x256xf32> to vector<4x255xf32>
    %14 = vector.extract_strided_slice %1 {offsets = [0, 0], sizes = [4, 1], strides = [1, 1]} : vector<4x256xf32> to vector<4x1xf32>
    %15 = tpu.concatenate %13, %14 in 1 : vector<4x255xf32>, vector<4x1xf32> -> vector<4x256xf32>
    %16 = vector.broadcast %4 : vector<1x256xf32> to vector<4x256xf32>
    %17 = arith.mulf %15, %16 : vector<4x256xf32>
    %18 = vector.extract_strided_slice %12 {offsets = [0, 240], sizes = [4, 16], strides = [1, 1]} : vector<4x256xf32> to vector<4x16xf32>
    %19 = vector.extract_strided_slice %12 {offsets = [0, 0], sizes = [4, 240], strides = [1, 1]} : vector<4x256xf32> to vector<4x240xf32>
    %20 = tpu.concatenate %18, %19 in 1 : vector<4x16xf32>, vector<4x240xf32> -> vector<4x256xf32>
    %21 = vector.broadcast %5 : vector<1x256xf32> to vector<4x256xf32>
    %22 = arith.mulf %20, %21 : vector<4x256xf32>
    %23 = vector.extract_strided_slice %7 {offsets = [0, 0], sizes = [4, 1], strides = [1, 1]} : vector<4x9xf32> to vector<4x1xf32>
    %24 = vector.broadcast %23 : vector<4x1xf32> to vector<4x256xf32>
    %25 = arith.mulf %22, %24 : vector<4x256xf32>
    %26 = vector.extract_strided_slice %1 {offsets = [0, 240], sizes = [4, 16], strides = [1, 1]} : vector<4x256xf32> to vector<4x16xf32>
    %27 = vector.extract_strided_slice %1 {offsets = [0, 0], sizes = [4, 240], strides = [1, 1]} : vector<4x256xf32> to vector<4x240xf32>
    %28 = tpu.concatenate %26, %27 in 1 : vector<4x16xf32>, vector<4x240xf32> -> vector<4x256xf32>
    %29 = vector.broadcast %5 : vector<1x256xf32> to vector<4x256xf32>
    %30 = arith.mulf %28, %29 : vector<4x256xf32>
    %31 = vector.extract_strided_slice %7 {offsets = [0, 1], sizes = [4, 1], strides = [1, 1]} : vector<4x9xf32> to vector<4x1xf32>
    %32 = vector.broadcast %31 : vector<4x1xf32> to vector<4x256xf32>
    %33 = arith.mulf %30, %32 : vector<4x256xf32>
    %34 = arith.addf %25, %33 : vector<4x256xf32>
    %35 = vector.extract_strided_slice %17 {offsets = [0, 240], sizes = [4, 16], strides = [1, 1]} : vector<4x256xf32> to vector<4x16xf32>
    %36 = vector.extract_strided_slice %17 {offsets = [0, 0], sizes = [4, 240], strides = [1, 1]} : vector<4x256xf32> to vector<4x240xf32>
    %37 = tpu.concatenate %35, %36 in 1 : vector<4x16xf32>, vector<4x240xf32> -> vector<4x256xf32>
    %38 = vector.broadcast %5 : vector<1x256xf32> to vector<4x256xf32>
    %39 = arith.mulf %37, %38 : vector<4x256xf32>
    %40 = vector.extract_strided_slice %7 {offsets = [0, 2], sizes = [4, 1], strides = [1, 1]} : vector<4x9xf32> to vector<4x1xf32>
    %41 = vector.broadcast %40 : vector<4x1xf32> to vector<4x256xf32>
    %42 = arith.mulf %39, %41 : vector<4x256xf32>
    %43 = arith.addf %34, %42 : vector<4x256xf32>
    %44 = vector.extract_strided_slice %7 {offsets = [0, 3], sizes = [4, 1], strides = [1, 1]} : vector<4x9xf32> to vector<4x1xf32>
    %45 = vector.broadcast %44 : vector<4x1xf32> to vector<4x256xf32>
    %46 = arith.mulf %12, %45 : vector<4x256xf32>
    %47 = arith.addf %43, %46 : vector<4x256xf32>
    %48 = vector.extract_strided_slice %7 {offsets = [0, 4], sizes = [4, 1], strides = [1, 1]} : vector<4x9xf32> to vector<4x1xf32>
    %49 = vector.broadcast %48 : vector<4x1xf32> to vector<4x256xf32>
    %50 = arith.mulf %1, %49 : vector<4x256xf32>
    %51 = arith.addf %47, %50 : vector<4x256xf32>
    %52 = vector.extract_strided_slice %7 {offsets = [0, 5], sizes = [4, 1], strides = [1, 1]} : vector<4x9xf32> to vector<4x1xf32>
    %53 = vector.broadcast %52 : vector<4x1xf32> to vector<4x256xf32>
    %54 = arith.mulf %17, %53 : vector<4x256xf32>
    %55 = arith.addf %51, %54 : vector<4x256xf32>
    %56 = vector.extract_strided_slice %12 {offsets = [0, 16], sizes = [4, 240], strides = [1, 1]} : vector<4x256xf32> to vector<4x240xf32>
    %57 = vector.extract_strided_slice %12 {offsets = [0, 0], sizes = [4, 16], strides = [1, 1]} : vector<4x256xf32> to vector<4x16xf32>
    %58 = tpu.concatenate %56, %57 in 1 : vector<4x240xf32>, vector<4x16xf32> -> vector<4x256xf32>
    %59 = vector.broadcast %6 : vector<1x256xf32> to vector<4x256xf32>
    %60 = arith.mulf %58, %59 : vector<4x256xf32>
    %61 = vector.extract_strided_slice %7 {offsets = [0, 6], sizes = [4, 1], strides = [1, 1]} : vector<4x9xf32> to vector<4x1xf32>
    %62 = vector.broadcast %61 : vector<4x1xf32> to vector<4x256xf32>
    %63 = arith.mulf %60, %62 : vector<4x256xf32>
    %64 = arith.addf %55, %63 : vector<4x256xf32>
    %65 = vector.extract_strided_slice %1 {offsets = [0, 16], sizes = [4, 240], strides = [1, 1]} : vector<4x256xf32> to vector<4x240xf32>
    %66 = vector.extract_strided_slice %1 {offsets = [0, 0], sizes = [4, 16], strides = [1, 1]} : vector<4x256xf32> to vector<4x16xf32>
    %67 = tpu.concatenate %65, %66 in 1 : vector<4x240xf32>, vector<4x16xf32> -> vector<4x256xf32>
    %68 = vector.broadcast %6 : vector<1x256xf32> to vector<4x256xf32>
    %69 = arith.mulf %67, %68 : vector<4x256xf32>
    %70 = vector.extract_strided_slice %7 {offsets = [0, 7], sizes = [4, 1], strides = [1, 1]} : vector<4x9xf32> to vector<4x1xf32>
    %71 = vector.broadcast %70 : vector<4x1xf32> to vector<4x256xf32>
    %72 = arith.mulf %69, %71 : vector<4x256xf32>
    %73 = arith.addf %64, %72 : vector<4x256xf32>
    %74 = vector.extract_strided_slice %17 {offsets = [0, 16], sizes = [4, 240], strides = [1, 1]} : vector<4x256xf32> to vector<4x240xf32>
    %75 = vector.extract_strided_slice %17 {offsets = [0, 0], sizes = [4, 16], strides = [1, 1]} : vector<4x256xf32> to vector<4x16xf32>
    %76 = tpu.concatenate %74, %75 in 1 : vector<4x240xf32>, vector<4x16xf32> -> vector<4x256xf32>
    %77 = vector.broadcast %6 : vector<1x256xf32> to vector<4x256xf32>
    %78 = arith.mulf %76, %77 : vector<4x256xf32>
    %79 = vector.extract_strided_slice %7 {offsets = [0, 8], sizes = [4, 1], strides = [1, 1]} : vector<4x9xf32> to vector<4x1xf32>
    %80 = vector.broadcast %79 : vector<4x1xf32> to vector<4x256xf32>
    %81 = arith.mulf %78, %80 : vector<4x256xf32>
    %82 = arith.addf %73, %81 : vector<4x256xf32>
    %c0_6 = arith.constant 0 : index
    %c0_7 = arith.constant 0 : index
    %83 = vector.load %arg4[%c0_6, %c0_7] : memref<4x4xf32, #tpu.memory_space<vmem>>, vector<4x4xf32>
    %84 = vector.extract_strided_slice %82 {offsets = [0, 0], sizes = [1, 256], strides = [1, 1]} : vector<4x256xf32> to vector<1x256xf32>
    %85 = vector.shape_cast %84 : vector<1x256xf32> to vector<1x256xf32>
    %86 = vector.broadcast %85 : vector<1x256xf32> to vector<4x256xf32>
    %87 = vector.extract_strided_slice %83 {offsets = [0, 0], sizes = [4, 1], strides = [1, 1]} : vector<4x4xf32> to vector<4x1xf32>
    %88 = vector.broadcast %87 : vector<4x1xf32> to vector<4x256xf32>
    %89 = arith.mulf %86, %88 : vector<4x256xf32>
    %90 = vector.extract_strided_slice %82 {offsets = [1, 0], sizes = [1, 256], strides = [1, 1]} : vector<4x256xf32> to vector<1x256xf32>
    %91 = vector.shape_cast %90 : vector<1x256xf32> to vector<1x256xf32>
    %92 = vector.broadcast %91 : vector<1x256xf32> to vector<4x256xf32>
    %93 = vector.extract_strided_slice %83 {offsets = [0, 1], sizes = [4, 1], strides = [1, 1]} : vector<4x4xf32> to vector<4x1xf32>
    %94 = vector.broadcast %93 : vector<4x1xf32> to vector<4x256xf32>
    %95 = arith.mulf %92, %94 : vector<4x256xf32>
    %96 = arith.addf %89, %95 : vector<4x256xf32>
    %97 = vector.extract_strided_slice %82 {offsets = [2, 0], sizes = [1, 256], strides = [1, 1]} : vector<4x256xf32> to vector<1x256xf32>
    %98 = vector.shape_cast %97 : vector<1x256xf32> to vector<1x256xf32>
    %99 = vector.broadcast %98 : vector<1x256xf32> to vector<4x256xf32>
    %100 = vector.extract_strided_slice %83 {offsets = [0, 2], sizes = [4, 1], strides = [1, 1]} : vector<4x4xf32> to vector<4x1xf32>
    %101 = vector.broadcast %100 : vector<4x1xf32> to vector<4x256xf32>
    %102 = arith.mulf %99, %101 : vector<4x256xf32>
    %103 = arith.addf %96, %102 : vector<4x256xf32>
    %104 = vector.extract_strided_slice %82 {offsets = [3, 0], sizes = [1, 256], strides = [1, 1]} : vector<4x256xf32> to vector<1x256xf32>
    %105 = vector.shape_cast %104 : vector<1x256xf32> to vector<1x256xf32>
    %106 = vector.broadcast %105 : vector<1x256xf32> to vector<4x256xf32>
    %107 = vector.extract_strided_slice %83 {offsets = [0, 3], sizes = [4, 1], strides = [1, 1]} : vector<4x4xf32> to vector<4x1xf32>
    %108 = vector.broadcast %107 : vector<4x1xf32> to vector<4x256xf32>
    %109 = arith.mulf %106, %108 : vector<4x256xf32>
    %110 = arith.addf %103, %109 : vector<4x256xf32>
    %c0_8 = arith.constant 0 : index
    %c0_9 = arith.constant 0 : index
    %111 = vector.load %arg5[%c0_8, %c0_9] : memref<4x1xf32, #tpu.memory_space<vmem>>, vector<4x1xf32>
    %112 = vector.broadcast %111 : vector<4x1xf32> to vector<4x256xf32>
    %113 = arith.addf %110, %112 : vector<4x256xf32>
    %cst = arith.constant 0.000000e+00 : f32
    %114 = vector.broadcast %cst : f32 to vector<4x256xf32>
    %115 = arith.maximumf %113, %114 : vector<4x256xf32>
    %c0_10 = arith.constant 0 : index
    %c0_11 = arith.constant 0 : index
    %c0_12 = arith.constant 0 : index
    %116 = vector.load %arg6[%c0_10, %c0_11, %c0_12] : memref<1x4x256xf32, #tpu.memory_space<vmem>>, vector<1x4x256xf32>
    %117 = vector.shape_cast %116 : vector<1x4x256xf32> to vector<4x256xf32>
    %118 = vector.shape_cast %115 : vector<4x256xf32> to vector<1x4x256xf32>
    tpu.vector_store %arg6[%c0_10, %c0_11, %c0_12], %118 {strides = array<i32>} : memref<1x4x256xf32, #tpu.memory_space<vmem>>, vector<1x4x256xf32>,
    return
  }
  func.func @transform_0(%arg0: i32) -> (i32, i32, i32) {
    %c0_i32 = arith.constant 0 : i32
    %c0_i32_0 = arith.constant 0 : i32
    %c0_i32_1 = arith.constant 0 : i32
    return %arg0, %c0_i32, %c0_i32_0 : i32, i32, i32
  }
  func.func @transform_1(%arg0: i32) -> (i32, i32) {
    %c0_i32 = arith.constant 0 : i32
    %c0_i32_0 = arith.constant 0 : i32
    %c0_i32_1 = arith.constant 0 : i32
    return %c0_i32, %c0_i32_0 : i32, i32
  }
  func.func @transform_2(%arg0: i32) -> (i32, i32) {
    %c0_i32 = arith.constant 0 : i32
    %c0_i32_0 = arith.constant 0 : i32
    %c0_i32_1 = arith.constant 0 : i32
    return %c0_i32, %c0_i32_0 : i32, i32
  }
  func.func @transform_3(%arg0: i32) -> (i32, i32) {
    %c0_i32 = arith.constant 0 : i32
    %c0_i32_0 = arith.constant 0 : i32
    %c0_i32_1 = arith.constant 0 : i32
    return %c0_i32, %c0_i32_0 : i32, i32
  }
  func.func @transform_4(%arg0: i32) -> (i32, i32) {
    %c0_i32 = arith.constant 0 : i32
    %c0_i32_0 = arith.constant 0 : i32
    %c0_i32_1 = arith.constant 0 : i32
    return %c0_i32, %c0_i32_0 : i32, i32
  }
  func.func @transform_5(%arg0: i32) -> (i32, i32, i32) {
    %c0_i32 = arith.constant 0 : i32
    %c0_i32_0 = arith.constant 0 : i32
    %c0_i32_1 = arith.constant 0 : i32
    return %arg0, %c0_i32, %c0_i32_0 : i32, i32, i32
  }
}

</mosaic_0001>

<bundles_post_ra>
// kernel: tpu_custom_call.1
= control target key start
LH: loop header
LB: loop body
LE: loop exit
PB: predicated region body
PF: predicated region fallthrough
CT: control target
= control target key end

     0   :  { %10 = vsyncpa [#allocation3], 0  ;;  %s1284_s0 = inlined_call_operand.hbm [shape: f32[2,4,256], index: 0, kind: input, shape index: {}]   ;;  %s1285_s1 = inlined_call_operand.hbm [shape: f32[4,256], index: 1, kind: input, shape index: {}]   ;;  %s1286_s2 = inlined_call_operand.vmem [shape: f32[4,9], index: 2, kind: input, shape index: {}]   ;;  %s1287_s3 = inlined_call_operand.vmem [shape: f32[4,4], index: 3, kind: input, shape index: {}]   ;;  %s1288_s4 = inlined_call_operand.vmem [shape: f32[4,1], index: 4, kind: input, shape index: {}]   ;;  %s1289_s5 = inlined_call_operand.hbm [shape: f32[2,4,256], index: 5, kind: output, shape index: {}]  }
   0x1   :  { %12 = vsyncpa [#allocation3 + $0x1], 0 }
   0x2   :  { %13 = vsyncpa [#allocation6], 0 }
   0x3   :  { %14 = vsyncpa [#allocation4], 0 }
   0x4   :  { %16 = vsyncpa [#allocation4 + $0x1], 0  ;;  %s958_s18 = smov 0   ;;  %s960_s19 = smov 0  }
   0x5   :  { %s962_s20 = smov 0   ;;  %s964_s21 = smov 0  }
   0x6 LB: > { %s979_s22 = sadd.s32 4294967295, %s909_s21   ;;  %s682_s23 = sadd.s32 4294967294, %s909_s21   ;;  %s909_s21 = sphi %s964_s21, %s1312_s21   ;;  %s905_s20 = sphi %s962_s20, %s1311_s20   ;;  %s901_s19 = sphi %s960_s19, %s1310_s19   ;;  %s897_s18 = sphi %s958_s18, %s1309_s18  }
   0x7   : > { %p42_p0 = scmp.ne.s32.totalorder %s901_s19, %s897_s18  ;;  %p1290_p1 = scmp.eq.s32.totalorder %s979_s22, 0 }
   0x8   : > { %p156_p3 = scmp.eq.s32.totalorder %s682_s23, 1  ;;  %p683_p5 = scmp.ge.s32.totalorder %s909_s21, 1 }
   0x9   : > { %p988_p4 = por %p1290_p1, %p42_p0  ;;  %p163_p7 = scmp.lt.s32.totalorder %s909_s21, 3 }
   0xa   : > { %p993_p6 = por %p156_p3, %p42_p0  ;;  %s911_s27 = smov [#allocation5]  }
   0xb   : > { %s1294_s24 = scalar_select %p988_p4, 1, 0 }
   0xc   : > { %s1295_s25 = scalar_select %p993_p6, 1, 0 }
   0xd   : > { %p998_p8 = pnand %p683_p5, %p163_p7  ;;  %s176_s28 = sshll.u32 %s911_s27, 4  ;;  %s177_s28 = int_to_ptr.vmem [resolvable:$true] %s176_s28 }
   0xe   : > { %s1006_s29 = sadd.s32 1, %s909_s21   ;;  %s29_s8 = sadd.s32 1, %s905_s20 }
   0xf   : > { %s1296_s26 = scalar_select %p998_p8, 1, 0 }
  0x10   : > { %p708_p10 = pneg %p998_p8  ;;  %s26_s6 = ssub.s32 %s909_s21, %s1006_s29 }
  0x11   : > { %p1016_p12 = scmp.eq.s32.totalorder %s26_s6, 0  ;;  %p36_p13 = scmp.ne.s32.totalorder %s905_s20, %s901_s19 }
  0x12   : > { %p1010_p11 = pnand %p708_p10, %p1290_p1  ;;  %s798_s9 = scalar_lea.vmem %s177_s28, 128 }
  0x13   : > { %p799_p3 = scmp.ne.s32.totalorder %s177_s28, %s798_s9  ;;  %p806_p9 = scmp.lt.s32.totalorder %s177_s28, %s177_s28 }
  0x14   : > { %p789_p0 = pneg %p1010_p11  ;;  %p807_p2 = scmp.lt.s32.totalorder %s798_s9, %s798_s9 }
  0x16   : > { %p801_p5 = pnand %p799_p3, %p789_p0  ;;  %p808_p10 = por %p807_p2, %p806_p9 }
  0x18   : > { %p802_p7 = pneg %p801_p5 }
  0x1a   : > { %p809_p1 = pnand %p808_p10, %p802_p7 }
  0x1c   : > { %812 = shalt.err (!%p809_p1)
}
  0x1d   : > { %711 = dma.hbm_to_vmem [thread:$0]  (!%p1010_p11), %s1285_s1, 128, %s177_s28, [#allocation6]  }
  0x1e   : > { %s1033_s12 = scalar_select %p1016_p12, %s905_s20, %s29_s8  }
  0x1f   : > { %p37_p1 = scmp.eq.s32.totalorder %s909_s21, 0  ;;  %p1299_p2 = scmp.eq.s32.totalorder %s979_s22, 1 }
  0x20   : > { %p721_p0 = scmp.lt.s32.totalorder %s909_s21, 2  ;;  %s196_s14 = sand.u32 1, %s905_s20  }
  0x21   : > { %p1041_p9 = por %p1299_p2, %p36_p13  ;;  %p38_p3 = por %p37_p1, %p36_p13 }
  0x22   : > { %s686_s15 = sshll.u32 %s196_s14, 3  ;;  %s698_s16 = sshll.u32 %s909_s21, 7 }
  0x23   : > { %s1300_s13 = scalar_select %p1041_p9, 1, 0 }
  0x24   : > { %s1054_s27 = scalar_lea.hbm %s1284_s0, %s698_s16  ;;  %s200_s28 = scalar_lea.vmem [#allocation2], %s686_s15 }
  0x25   : > { %s208_s30 = sshll.u32 %s200_s28, 4  ;;  %p1056_p11 = pnand %p721_p0, %p38_p3  ;;  %s209_s30 = int_to_ptr.vmem [resolvable:$true] %s208_s30 }
  0x26   : > { %s197_s7 = scalar_lea.sflag [#allocation3], %s196_s14  ;;  %s813_s8 = scalar_lea.hbm %s1054_s27, 128 }
  0x27   : > { %p814_p12 = scmp.ne.s32.totalorder %s1054_s27, %s813_s8  ;;  %p815_p13 = pneg %p1056_p11 }
  0x28   : > { %s818_s11 = scalar_lea.hbm %s1284_s0, 256  ;;  %p819_p10 = scmp.lt.s32.totalorder %s1054_s27, %s1284_s0 }
  0x29   : > { %p816_p5 = pnand %p815_p13, %p814_p12  ;;  %p820_p1 = scmp.lt.s32.totalorder %s818_s11, %s813_s8 }
  0x2b   : > { %p817_p7 = pneg %p816_p5  ;;  %p821_p2 = por %p820_p1, %p819_p10 }
  0x2d   : > { %p822_p0 = pnand %p821_p2, %p817_p7 }
  0x2f   : > { %825 = shalt.err (!%p822_p0)
}
  0x30   : > { %s826_s17 = scalar_lea.vmem %s209_s30, 128  ;;  %s912_s14 = smov [#allocation2]  }
  0x31   : > { %p827_p3 = scmp.ne.s32.totalorder %s209_s30, %s826_s17  ;;  %s831_s23 = sshll.u32 %s912_s14, 4  ;;  %s832_s23 = int_to_ptr.vmem [resolvable:$false] %s831_s23 }
  0x32   : > { %s833_s28 = scalar_lea.vmem %s832_s23, 256  ;;  %p834_p12 = scmp.lt.s32.totalorder %s209_s30, %s832_s23 }
  0x33   : > { %p829_p6 = pnand %p827_p3, %p815_p13  ;;  %p835_p5 = scmp.lt.s32.totalorder %s833_s28, %s826_s17 }
  0x35   : > { %p830_p9 = pneg %p829_p6  ;;  %p836_p4 = por %p835_p5, %p834_p12 }
  0x37   : > { %p837_p8 = pnand %p836_p4, %p830_p9 }
  0x39   : > { %840 = shalt.err (!%p837_p8)
}
  0x3a   : > { %715 = dma.hbm_to_vmem [thread:$0]  (!%p1056_p11), %s1054_s27, 128, %s209_s30, %s197_s7  }
  0x3b   : > { %p1302_p7 = scmp.ne.s32.totalorder %s1296_s26, 0 }
  0x3c   : > { %s1077_s8 = sand.u32 (!%p1302_p7), 1, %s901_s19   ;;  %p1303_p4 = scmp.ne.s32.totalorder (!%p1302_p7), %s1294_s24, 0 }
  0x3d   : > { %217 = sbr.rel (%p1302_p7) target bundleno = 373 (0x175), region = 40  ;;  %s690_s9 = sshll.u32 (!%p1302_p7), %s1077_s8, 3 }
  0x3e   : > { %s220_s10 = scalar_lea.sflag (!%p1302_p7), [#allocation3], %s1077_s8  ;;  %s223_s11 = scalar_lea.vmem (!%p1302_p7), [#allocation2], %s690_s9 }
  0x42   : > { %884 = dma.done.wait (%p1303_p4), %s220_s10, 128  }
  0x43   : > { %886 = vsyncadd (%p1303_p4), %s220_s10, 4294967168  ;;  %p1304_p6 = scmp.eq.s32.totalorder %s979_s22, 0 }
  0x45   : > { %888 = dma.done.wait (%p1304_p6), [#allocation6], 128   ;;  %p1305_p8 = pmov %p1304_p6 }
  0x46   : > { %v913_v0 = vmov 1   ;;  %v914_v1 = vmov 0   ;;  %v1092_v2 = vld [vmem:[%s223_s11] sm:$0xff]  ;;  %s915_s26 = smov 127   ;;  %s916_s24 = smov 1   ;;  %v270_v4 = vlaneseq  ;;  %v1110_v9 = vld [vmem:[#allocation5] sm:$0xff] }
  0x47   : > { %890 = vsyncadd (%p1305_p8), [#allocation6], 4294967168  ;;  %772 = vset.pattern.permute.xlu1 %v913_v0  ;;  %771 = vset.pattern.permute.xlu0 %v914_v1  ;;  %v258_v3 = vcombine.high %v1092_v2, %v1092_v2  ;;  %v1100_v5 = vld [vmem:[%s1286_s2] sm:$0xf]  ;;  %s917_s6 = smov 16   ;;  %v918_v14 = vmov 2  }
  0x48   : > { %290 = vrot.lane.b32.xlu1 %v1092_v2, %s915_s26  ;;  %v1103_v6 = vshrl.u32 %v270_v4, 7  ;;  %v919_v15 = vmov 4   ;;  %v920_v16 = vmov 5   ;;  %v921_v17 = vmov 3   ;;  %s924_s7 = smov 112   ;;  %s699_s23 = sshll.u32 %s979_s22, 7 }
  0x49   : > { %259 = vrot.lane.b32.xlu0 %v258_v3, %s916_s24  ;;  %v922_v18 = vmov 6   ;;  %v923_v19 = vmov 7   ;;  %v925_v22 = vmov 8   ;;  %vm264_vm0 = vcmask 7168   ;;  %v508_v51 = vld [vmem:[%s1287_s3] sm:$0xf] }
  0x4a   : > { %v1107_v7 = vsub.s32 2, %v1103_v6  ;;  %v338_v8 = vsub.s32 6, %v1103_v6  ;;  %v1135_v20 = vsub.s32 3, %v1103_v6  ;;  %v448_v21 = vsub.s32 7, %v1103_v6  ;;  %v572_v52 = vld [vmem:[%s1288_s4] sm:$0xf] }
  0x4b   : > { %v1149_v27 = vsub.s32 0, %v1103_v6  ;;  %v276_v28 = vsub.s32 4, %v1103_v6  ;;  %v306_v30 = vsub.s32 5, %v1103_v6  ;;  %v1157_v34 = vsub.s32 1, %v1103_v6  ;;  %s253_s28 = scalar_lea.vmem [#allocation7], %s690_s9  ;;  %s588_s27 = scalar_lea.sflag [#allocation4], %s1077_s8 }
  0x4c   : > { %292 = vrot.lane.b32.xlu1 %v258_v3, %s915_s26  ;;  %v335_v10 = vrot.slane %v1110_v9, %v1107_v7  ;;  %v339_v11 = vrot.slane %v1110_v9, %v338_v8  ;;  %v445_v23 = vrot.slane %v1110_v9, %v1135_v20  ;;  %v449_v24 = vrot.slane %v1110_v9, %v448_v21  ;;  %s602_s10 = sshll.u32 %s253_s28, 4  ;;  %p1306_p11 = scmp.ne.s32.totalorder %s1300_s13, 0  ;;  %s603_s10 = int_to_ptr.vmem [resolvable:$true] %s602_s10 }
  0x4d   : > { %262 = vrot.lane.b32.xlu0 %v1092_v2, %s916_s24  ;;  %v273_v31 = vrot.slane %v1110_v9, %v1149_v27  ;;  %v277_v32 = vrot.slane %v1110_v9, %v276_v28  ;;  %v307_v35 = vrot.slane %v1110_v9, %v306_v30  ;;  %vm294_vm1 = vcmask 1039360   ;;  %s600_s24 = scalar_lea.hbm %s1289_s5, %s699_s23  ;;  %s841_s30 = scalar_lea.vmem %s603_s10, 128 }
  0x4e   : > { %v1118_v12 = vrot.slane %v335_v10, %v1107_v7  ;;  %v1121_v13 = vrot.slane %v339_v11, %v1107_v7  ;;  %v1143_v25 = vrot.slane %v445_v23, %v1135_v20  ;;  %v1146_v26 = vrot.slane %v449_v24, %v1135_v20  ;;  %p842_p9 = scmp.ne.s32.totalorder %s603_s10, %s841_s30 }
  0x4f   : > { %v283_v36 = vrot.slane %v273_v31, %v1149_v27  ;;  %v287_v37 = vrot.slane %v277_v32, %v1149_v27  ;;  %v303_v42 = vrot.slane %v1110_v9, %v1157_v34  ;;  %v317_v43 = vrot.slane %v307_v35, %v1157_v34 }
  0x50   : > { %371 = vperm.xlu1 %772, %v1100_v5   ;;  %vm327_vm2 = vcmask 130048   ;;  %vm436_vm3 = vcmask 916480   ;;  %p843_p13 = pnand %p842_p9, %p1306_p11 }
  0x51   : > { %354 = vperm.xlu0 %771, %v1100_v5   ;;  %v313_v47 = vrot.slane %v303_v42, %v1157_v34 }
  0x52   : > { %p844_p10 = pneg %p843_p13 }
  0x54   : > { %359 = vrot.lane.b32.xlu1 %v258_v3, %s917_s6 }
  0x55   : > { %773 = vset.pattern.permute.xlu1 %v918_v14  ;;  %362 = vrot.lane.b32.xlu0 %v1092_v2, %s917_s6 }
  0x56   : > { %774 = vset.pattern.permute.xlu0 %v919_v15 }
  0x58   : > { %392 = vperm.xlu1 %773, %v1100_v5  }
  0x59   : > { %408 = vperm.xlu0 %774, %v1100_v5  }
  0x5c   : > { %776 = vset.pattern.permute.xlu1 %v920_v16 }
  0x5d   : > { %425 = vperm.xlu1 %776, %v1100_v5   ;;  %775 = vset.pattern.permute.xlu0 %v921_v17 }
  0x5e   : > { %400 = vperm.xlu0 %775, %v1100_v5  }
  0x61   : > { %777 = vset.pattern.permute.xlu1 %v922_v18 }
  0x62   : > { %463 = vperm.xlu1 %777, %v1100_v5   ;;  %778 = vset.pattern.permute.xlu0 %v923_v19 }
  0x63   : > { %482 = vperm.xlu0 %778, %v1100_v5  }
  0x66   : > { %470 = vrot.lane.b32.xlu1 %v1092_v2, %s924_s7 }
  0x67   : > { %781 = vset.pattern.permute.xlu1 %v913_v0  ;;  %779 = vset.pattern.permute.xlu0 %v925_v22  ;;  %v926_v0 = vmov 839922192  }
  0x6a   : > { %472 = vrot.lane.b32.xlu1 %v258_v3, %s924_s7  ;;  %v411_v3 = vunpack.c.l.s4 %v926_v0 }
  0xba   : > { %v291_v29 = vpop.permute.xlu1 %290 }
  0xbb   : > { %v260_v33 = vpop.permute.xlu0 %259 }
  0xbe   : > { %v293_v38 = vpop.permute.xlu1 %292 }
  0xbf   : > { %v263_v39 = vpop.permute.xlu0 %262  ;;  %v299_v46 = vsel %vm294_vm1, %v293_v38, %v291_v29  ;;  %v295_v49 = vsel %vm294_vm1, %v291_v29, %v293_v38 }
  0xc0   : > { %v265_v40 = vsel %vm264_vm0, %v263_v39, %v260_v33  ;;  %v268_v41 = vsel %vm264_vm0, %v260_v33, %v263_v39  ;;  %v1174_v48 = vmul.f32 %v317_v43, %v299_v46  ;;  %v1179_v50 = vmul.f32 %v313_v47, %v295_v49 }
  0xc1   : > { %v1165_v44 = vmul.f32 %v283_v36, %v268_v41  ;;  %v1167_v45 = vmul.f32 %v287_v37, %v265_v40 }
  0xc3   : > { %325 = vrot.lane.b32.xlu0 %v1165_v44, %s917_s6  ;;  %321 = vrot.lane.b32.xlu1 %v1167_v45, %s917_s6 }
  0xc7   : > { %501 = vperm.xlu0 %779, %v1100_v5   ;;  %379 = vrot.lane.b32.xlu1 %v1174_v48, %s917_s6  ;;  %v412_v5 = vunpack.c.0.s8 %v411_v3 }
  0xc9   : > { %v415_v15 = vsub.s32 %v412_v5, %v1103_v6 }
  0xcb   : > { %432 = vrot.lane.b32.xlu0 %v1165_v44, %s924_s7  ;;  %383 = vrot.lane.b32.xlu1 %v1179_v50, %s917_s6  ;;  %v372_v53 = vpop.permute.xlu1 %371  ;;  %s927_s6 = smov [#allocation7]  }
  0xcc   : > { %780 = vset.pattern.permute.xlu0 %v914_v1  ;;  %v355_v55 = vpop.permute.xlu0 %354  ;;  %s845_s22 = sshll.u32 %s927_s6, 4  ;;  %s846_s22 = int_to_ptr.vmem [resolvable:$false] %s845_s22 }
  0xcd   : > { %s847_s9 = scalar_lea.vmem %s846_s22, 256  ;;  %p848_p1 = scmp.lt.s32.totalorder %s603_s10, %s846_s22 }
  0xce   : > { %p849_p2 = scmp.lt.s32.totalorder %s847_s9, %s841_s30 }
  0xcf   : > { %434 = vrot.lane.b32.xlu1 %v1167_v45, %s924_s7  ;;  %519 = vperm.xlu0 %780, %v508_v51   ;;  %v360_v54 = vpop.permute.xlu1 %359 }
  0xd0   : > { %v363_v57 = vpop.permute.xlu0 %362  ;;  %p850_p0 = por %p849_p2, %p848_p1 }
  0xd1   : > { %v364_v11 = vsel %vm327_vm2, %v363_v57, %v360_v54 }
  0xd2   : > { %v369_v21 = vmul.f32 %v364_v11, %v1121_v13  ;;  %p851_p3 = pnand %p850_p0, %p844_p10 }
  0xd3   : > { %489 = vrot.lane.b32.xlu1 %v1179_v50, %s924_s7  ;;  %783 = vset.pattern.permute.xlu0 %v921_v17  ;;  %v393_v56 = vpop.permute.xlu1 %392 }
  0xd4   : > { %565 = vperm.xlu0 %783, %v508_v51   ;;  %v409_v59 = vpop.permute.xlu0 %408  ;;  %v375_v32 = vmul.f32 %v372_v53, %v369_v21 }
  0xd5   : > { %v416_v22 = vrot.slane %v409_v59, %v415_v15 }
  0xd7   : > { %491 = vrot.lane.b32.xlu1 %v1174_v48, %s924_s7  ;;  %v418_v35 = vmul.f32 %v416_v22, %v1092_v2 }
  0xd8   : > { %785 = vset.pattern.permute.xlu0 %v914_v1  ;;  %v426_v58 = vpop.permute.xlu1 %425 }
  0xd9   : > { %v401_v61 = vpop.permute.xlu0 %400  ;;  %v420_v49 = vcombine.high %v418_v35, %v418_v35 }
  0xda   : > { %v403_v42 = vmul.f32 %v401_v61, %v1165_v44  ;;  %v404_v43 = vmul.f32 %v401_v61, %v1167_v45 }
  0xdb   : > { %533 = vperm.xlu1 %781, %v508_v51  }
  0xdd   : > { %v1201_v60 = vpop.permute.xlu1 %463 }
  0xde   : > { %v1203_v63 = vpop.permute.xlu0 %482 }
  0xdf   : > { %782 = vset.pattern.permute.xlu1 %v918_v14  ;;  %v367_v14 = vsel %vm327_vm2, %v360_v54, %v363_v57  ;;  %v429_v54 = vmul.f32 %v426_v58, %v1174_v48 }
  0xe0   : > { %549 = vperm.xlu1 %782, %v508_v51   ;;  %v368_v19 = vmul.f32 %v367_v14, %v1118_v12 }
  0xe1   : > { %v471_v62 = vpop.permute.xlu1 %470 }
  0xe2   : > { %v374_v31 = vmul.f32 %v372_v53, %v368_v19  ;;  %v428_v53 = vmul.f32 %v426_v58, %v1179_v50 }
  0xe4   : > { %784 = vset.pattern.permute.xlu1 %v914_v1 }
  0xe5   : > { %575 = vperm.xlu1 %784, %v572_v52   ;;  %v473_v4 = vpop.permute.xlu1 %472 }
 0x135   : > { %v322_v1 = vpop.permute.xlu1 %321  ;;  %v326_v8 = vpop.permute.xlu0 %325 }
 0x136   : > { %v328_v9 = vsel %vm327_vm2, %v326_v8, %v322_v1  ;;  %v331_v10 = vsel %vm327_vm2, %v322_v1, %v326_v8 }
 0x137   : > { %v350_v16 = vmul.f32 %v1118_v12, %v331_v10  ;;  %v351_v17 = vmul.f32 %v1121_v13, %v328_v9 }
 0x139   : > { %v380_v18 = vpop.permute.xlu1 %379  ;;  %v357_v23 = vmul.f32 %v355_v55, %v350_v16  ;;  %v358_v24 = vmul.f32 %v355_v55, %v351_v17 }
 0x13b   : > { %v376_v36 = vadd.f32 %v374_v31, %v357_v23  ;;  %v377_v37 = vadd.f32 %v375_v32, %v358_v24 }
 0x13d   : > { %v384_v28 = vpop.permute.xlu1 %383 }
 0x13e   : > { %v385_v29 = vsel %vm327_vm2, %v384_v28, %v380_v18  ;;  %v388_v30 = vsel %vm327_vm2, %v380_v18, %v384_v28 }
 0x13f   : > { %v389_v6 = vmul.f32 %v388_v30, %v1118_v12  ;;  %v390_v33 = vmul.f32 %v385_v29, %v1121_v13  ;;  %v474_v12 = vsel %vm436_vm3, %v471_v62, %v473_v4  ;;  %v478_v13 = vsel %vm436_vm3, %v473_v4, %v471_v62 }
 0x140   : > { %v479_v59 = vmul.f32 %v474_v12, %v1143_v25  ;;  %v480_v61 = vmul.f32 %v478_v13, %v1146_v26 }
 0x141   : > { %v395_v38 = vmul.f32 %v393_v56, %v389_v6  ;;  %v396_v39 = vmul.f32 %v393_v56, %v390_v33  ;;  %v435_v40 = vpop.permute.xlu1 %434 }
 0x142   : > { %v502_v41 = vpop.permute.xlu0 %501  ;;  %v485_v10 = vmul.f32 %v1203_v63, %v479_v59  ;;  %v486_v11 = vmul.f32 %v1203_v63, %v480_v61 }
 0x143   : > { %v397_v46 = vadd.f32 %v395_v38, %v376_v36  ;;  %v398_v47 = vadd.f32 %v396_v39, %v377_v37 }
 0x145   : > { %v405_v51 = vadd.f32 %v403_v42, %v397_v46  ;;  %v406_v2 = vadd.f32 %v404_v43, %v398_v47  ;;  %v490_v52 = vpop.permute.xlu1 %489 }
 0x146   : > { %v433_v55 = vpop.permute.xlu0 %432 }
 0x147   : > { %v422_v56 = vadd.f32 %v418_v35, %v405_v51  ;;  %v423_v57 = vadd.f32 %v420_v49, %v406_v2  ;;  %v437_v44 = vsel %vm436_vm3, %v433_v55, %v435_v40  ;;  %v441_v45 = vsel %vm436_vm3, %v435_v40, %v433_v55 }
 0x148   : > { %v460_v62 = vmul.f32 %v1143_v25, %v437_v44  ;;  %v461_v0 = vmul.f32 %v1146_v26, %v441_v45 }
 0x149   : > { %v430_v3 = vadd.f32 %v428_v53, %v422_v56  ;;  %v431_v4 = vadd.f32 %v429_v54, %v423_v57  ;;  %v492_v50 = vpop.permute.xlu1 %491 }
 0x14a   : > { %v466_v48 = vmul.f32 %v1201_v60, %v460_v62  ;;  %v467_v58 = vmul.f32 %v1201_v60, %v461_v0  ;;  %v493_v5 = vsel %vm436_vm3, %v490_v52, %v492_v50  ;;  %v497_v1 = vsel %vm436_vm3, %v492_v50, %v490_v52  ;;  %v520_v24 = vpop.permute.xlu0 %519 }
 0x14b   : > { %v498_v8 = vmul.f32 %v493_v5, %v1143_v25  ;;  %v499_v9 = vmul.f32 %v497_v1, %v1146_v26 }
 0x14c   : > { %v468_v14 = vadd.f32 %v466_v48, %v430_v3  ;;  %v469_v15 = vadd.f32 %v467_v58, %v431_v4 }
 0x14d   : > { %v504_v16 = vmul.f32 %v502_v41, %v498_v8  ;;  %v505_v17 = vmul.f32 %v502_v41, %v499_v9 }
 0x14e   : > { %v487_v18 = vadd.f32 %v485_v10, %v468_v14  ;;  %v488_v19 = vadd.f32 %v486_v11, %v469_v15 }
 0x150   : > { %v506_v21 = vadd.f32 %v504_v16, %v487_v18  ;;  %v507_v60 = vadd.f32 %v505_v17, %v488_v19 }
 0x152   : > { %v559_v22 = vrot.slane %v506_v21, %v1135_v20  ;;  %v563_v23 = vrot.slane %v507_v60, %v1135_v20  ;;  %v543_v25 = vrot.slane %v506_v21, %v1107_v7  ;;  %v547_v26 = vrot.slane %v507_v60, %v1107_v7  ;;  %v566_v20 = vpop.permute.xlu0 %565 }
 0x153   : > { %v512_v28 = vrot.slane %v506_v21, %v1149_v27  ;;  %v516_v63 = vrot.slane %v507_v60, %v1149_v27  ;;  %v527_v30 = vrot.slane %v506_v21, %v1157_v34  ;;  %v531_v31 = vrot.slane %v507_v60, %v1157_v34 }
 0x154   : > { %v568_v40 = vmul.f32 %v566_v20, %v559_v22  ;;  %v569_v41 = vmul.f32 %v566_v20, %v563_v23 }
 0x155   : > { %v522_v33 = vmul.f32 %v520_v24, %v512_v28  ;;  %v523_v35 = vmul.f32 %v520_v24, %v516_v63 }
 0x156   : > { %v534_v29 = vpop.permute.xlu1 %533 }
 0x157   : > { %v536_v32 = vmul.f32 %v534_v29, %v527_v30  ;;  %v537_v6 = vmul.f32 %v534_v29, %v531_v31 }
 0x159   : > { %v538_v37 = vadd.f32 %v536_v32, %v522_v33  ;;  %v539_v7 = vadd.f32 %v537_v6, %v523_v35 }
 0x15b   : > { %v550_v36 = vpop.permute.xlu1 %549 }
 0x15c   : > { %v552_v38 = vmul.f32 %v550_v36, %v543_v25  ;;  %v553_v39 = vmul.f32 %v550_v36, %v547_v26 }
 0x15e   : > { %v554_v27 = vadd.f32 %v552_v38, %v538_v37  ;;  %v555_v42 = vadd.f32 %v553_v39, %v539_v7 }
 0x160   : > { %v576_v43 = vpop.permute.xlu1 %575  ;;  %v570_v46 = vadd.f32 %v568_v40, %v554_v27  ;;  %v571_v34 = vadd.f32 %v569_v41, %v555_v42 }
 0x162   : > { %v578_v47 = vadd.f32 %v576_v43, %v570_v46  ;;  %v579_v49 = vadd.f32 %v576_v43, %v571_v34 }
 0x164   : > { %v580_v12 = vmax.f32 %v578_v47, 0.0  ;;  %v581_v13 = vmax.f32 %v579_v49, 0.0 }
 0x166   : > { %v584_v51 = vcombine.low %v580_v12, %v581_v13 }
 0x168   : > { %586 = vst [vmem:[%s253_s28] sm:$0xff] %v584_v51 }
 0x169   : > { %854 = shalt.err (!%p851_p3)
}
 0x16a   : > { %s855_s7 = scalar_lea.hbm %s600_s24, 128  ;;  %s859_s15 = scalar_lea.hbm %s1289_s5, 256 }
 0x16b   : > { %p856_p12 = scmp.ne.s32.totalorder %s600_s24, %s855_s7  ;;  %p860_p4 = scmp.lt.s32.totalorder %s600_s24, %s1289_s5 }
 0x16c   : > { %p861_p6 = scmp.lt.s32.totalorder %s859_s15, %s855_s7 }
 0x16d   : > { %p857_p5 = pnand %p856_p12, %p1306_p11 }
 0x16e   : > { %p862_p8 = por %p861_p6, %p860_p4 }
 0x16f   : > { %p858_p7 = pneg %p857_p5 }
 0x171   : > { %p863_p9 = pnand %p862_p8, %p858_p7 }
 0x173   : > { %866 = shalt.err (!%p863_p9)
}
 0x174   : > { %706 = dma.vmem_to_hbm [thread:$0]  (%p1306_p11), %s603_s10, 128, %s600_s24, %s588_s27  }
 0x175 PF: > { %s614_s23 = sand.u32 1, %s897_s18   ;;  %p1307_p13 = scmp.ne.s32.totalorder %s1295_s25, 0 }
 0x176   : > { %p1308_p10 = scmp.ge.s32.totalorder %s909_s21, 2  ;;  %s615_s28 = scalar_lea.sflag [#allocation4], %s614_s23 }
 0x178   : > { %p717_p1 = pnand %p1308_p10, %p1307_p13 }
 0x17a   : > { %p718_p2 = pneg %p717_p1 }
 0x17c   : > { %892 = dma.done.wait (%p718_p2), %s615_s28, 128  }
 0x17d   : > { %894 = vsyncadd (%p718_p2), %s615_s28, 4294967168  ;;  %p19_p0 = scmp.ge.s32.totalorder %s1006_s29, 4   ;;  %s1309_s18 = smov %s901_s19 }
 0x17e   : > { %s1310_s19 = smov %s905_s20  ;;  %s1311_s20 = smov %s1033_s12 }
 0x17f   : > { %s1312_s21 = smov %s1006_s29  ;;  %21 = sbr.rel (!%p19_p0) target bundleno = 6 (0x6), region = 89 }
 0x184   :  { %620 = vsyncpa [#allocation3], 1 }
 0x185   :  { %622 = vsyncpa [#allocation3 + $0x1], 1 }
 0x186   :  { %623 = vsyncpa [#allocation6], 1 }
 0x187   :  { %624 = vsyncpa [#allocation4], 1 }
 0x188   :  { %626 = vsyncpa [#allocation4 + $0x1], 1 }

</bundles_post_ra>
